<compile_context>
chip_gen: v7x
topology: tpu7x:2x2x1
jax: 0.10.0
libtpu: 0.0.40
codegen_flags: <defaults>
</compile_context>

<pallas_src>
import numpy as np
import jax
import jax.numpy as jnp
from jax.experimental import pallas as pl
from jax.experimental.pallas import tpu as pltpu

CP = 128  # padded classifier lane width (lane-dense output store)


# ---------------------------------------------------------------------------
# Graph construction (host-side glue; mirrors build_intra_graph, densified
# per dialog).
# TODO(synk): the original build_intra_graph builds a ragged edge list with a
# Python cache dict; that dynamic construction has no clean Pallas equivalent,
# so it is done in NumPy and converted to dense per-dialog adjacencies here.
# ---------------------------------------------------------------------------
def build_intra_graph_packed(dialog_lengths, to_future_link, to_past_link, speakers, L_pad):
    """Returns:
      a_cat: [B, L_pad, 2*L_pad] -- [A_rel0 | A_rel1], message direction,
             row-normalized per target (RGCNConv 'mean' aggregation).
      a_msg: [B, L_pad, L_pad]   -- unnormalized message adjacency (GraphConv 'add').
    """
    dialog_lengths = np.asarray(dialog_lengths)
    speakers = np.asarray(speakers)
    B = dialog_lengths.shape[0]
    a_cat = np.zeros((B, L_pad, 2 * L_pad), np.float32)
    a_msg = np.zeros((B, L_pad, L_pad), np.float32)
    start = 0
    for bi in range(B):
        L = int(dialog_lengths[bi])
        adj = np.zeros((L, L), np.float32)
        for ii in range(L):
            adj[ii, ii] = 1.0
            adj[ii, ii + 1:min(ii + to_future_link + 1, L)] = 1.0
            adj[ii, max(ii - to_past_link, 0):ii] = 1.0
        # PyG message passing: edge source = row of adj, target = col
        # => message adjacency A_msg[target, source] = adj[source, target]
        amsg = np.ascontiguousarray(adj.T)
        spk = speakers[start:start + L]
        rel = np.outer(spk, spk).astype(np.int32)   # symmetric in {0, 1}
        for r in range(2):
            ar = amsg * (rel == r).astype(np.float32)
            deg = ar.sum(axis=1, keepdims=True)
            # RGCNConv default aggr='mean': normalize per target node / relation
            arn = np.where(deg > 0, ar / np.maximum(deg, 1.0), 0.0).astype(np.float32)
            a_cat[bi, :L, r * L_pad:r * L_pad + L] = arn
        a_msg[bi, :L, :L] = amsg
        start += L
    return a_cat, a_msg


# ---------------------------------------------------------------------------
# Pallas kernel: RGCNConv + GraphConv + skip Linear + classifier, fused.
# One grid step == one dialog tile.
# ---------------------------------------------------------------------------
def _diagcn_kernel(x_ref, acat_ref, am_ref,
                   wx_ref, brg_ref,
                   wgr_ref, wgt_ref, bgs_ref,
                   wcl_ref, bcl_ref,
                   out_ref):
    f32, bf16 = jnp.float32, jnp.bfloat16
    H = wgr_ref.shape[0]

    x = x_ref[0]                                                    # [L, F] bf16

    # --- fused x-side projection: [L,F] @ [F,4H] -> [L,128] (lane-dense) ---
    xw = jnp.dot(x, wx_ref[...], preferred_element_type=f32)        # f32 [L, 4H]
    xw01 = jnp.concatenate([xw[:, 0:H], xw[:, H:2 * H]], axis=0).astype(bf16)  # [2L, H]
    xroot = xw[:, 2 * H:3 * H]                                      # f32 [L, H]
    xskip = xw[:, 3 * H:4 * H]                                      # f32 [L, H]

    # --- RGCNConv: root + merged per-relation mean aggregation + bias ---
    h = xroot + jnp.dot(acat_ref[0], xw01, preferred_element_type=f32) + brg_ref[...]
    hb = h.astype(bf16)

    # --- GraphConv (aggr='add'): W_rel(sum_j h_j) + b + W_root(h_i), + skip ---
    agg = jnp.dot(am_ref[0], hb, preferred_element_type=f32)
    gs = (jnp.dot(agg.astype(bf16), wgr_ref[...], preferred_element_type=f32)
          + jnp.dot(hb, wgt_ref[...], preferred_element_type=f32)
          + xskip + bgs_ref[...])

    # --- classifier, padded to 128 output lanes -> unmasked vst ---
    out_ref[0] = (jnp.dot(gs.astype(bf16), wcl_ref[...], preferred_element_type=f32)
                  + bcl_ref[...])


def diagcn_forward(x_pack, a_cat, a_msg, params, n_classes):
    B, L_pad, F = x_pack.shape
    H = params["w_rel_gc"].shape[0]
    bf16, f32 = jnp.bfloat16, jnp.float32

    # host-side weight packing / padding
    w_x_cat = jnp.concatenate([params["w_rel0"], params["w_rel1"],
                               params["w_root_rgcn"], params["w_skip"]], axis=1)  # [F, 4H]
    w_cls_pad = jnp.zeros((H, CP), f32).at[:, :n_classes].set(params["w_cls"])
    b_cls_pad = jnp.zeros((1, CP), f32).at[:, :n_classes].set(params["b_cls"])
    b_gs = (params["b_gc"] + params["b_skip"]).astype(f32)

    args = (x_pack.astype(bf16), a_cat.astype(bf16), a_msg.astype(bf16),
            w_x_cat.astype(bf16), params["b_rgcn"].astype(f32),
            params["w_rel_gc"].astype(bf16), params["w_root_gc"].astype(bf16),
            b_gs,
            w_cls_pad.astype(bf16), b_cls_pad)

    in_specs = [
        pl.BlockSpec((1, L_pad, F), lambda b: (b, 0, 0)),            # x
        pl.BlockSpec((1, L_pad, 2 * L_pad), lambda b: (b, 0, 0)),    # [a0 | a1]
        pl.BlockSpec((1, L_pad, L_pad), lambda b: (b, 0, 0)),        # a_msg
        pl.BlockSpec((F, 4 * H), lambda b: (0, 0)),                  # W_x_cat (resident)
        pl.BlockSpec((1, H), lambda b: (0, 0)),                      # b_rgcn
        pl.BlockSpec((H, H), lambda b: (0, 0)),                      # w_rel_gc
        pl.BlockSpec((H, H), lambda b: (0, 0)),                      # w_root_gc
        pl.BlockSpec((1, H), lambda b: (0, 0)),                      # b_gc + b_skip
        pl.BlockSpec((H, CP), lambda b: (0, 0)),                     # w_cls (padded)
        pl.BlockSpec((1, CP), lambda b: (0, 0)),                     # b_cls (padded)
    ]
    out_specs = pl.BlockSpec((1, L_pad, CP), lambda b: (b, 0, 0))

    flops = 2 * B * (L_pad * F * 4 * H          # fused x projection
                     + L_pad * 2 * L_pad * H    # merged relation aggregation
                     + L_pad * L_pad * H        # GraphConv neighbor sum
                     + 2 * L_pad * H * H        # GraphConv rel/root projections
                     + L_pad * H * CP)          # padded classifier
    bytes_accessed = sum(int(a.size) * a.dtype.itemsize for a in args) + B * L_pad * CP * 4

    return pl.pallas_call(
        _diagcn_kernel,
        out_shape=jax.ShapeDtypeStruct((B, L_pad, CP), f32),
        grid=(B,),
        in_specs=in_specs,
        out_specs=out_specs,
        compiler_params=pltpu.CompilerParams(
            dimension_semantics=("parallel",)),   # dialogs split across TCs (v7x megacore)
        cost_estimate=pl.CostEstimate(flops=flops, transcendentals=0,
                                      bytes_accessed=bytes_accessed),
    )(*args)


if __name__ == "__main__":
    input_size, hidden_size, n_classes = 32, 32, 4
    to_future_link, to_past_link = 4, 4
    dialog_lengths = np.array([8, 8], dtype=np.int32)   # batch of 2 dialogs
    B = dialog_lengths.shape[0]
    N = int(dialog_lengths.sum())
    L_pad = int(-(-int(dialog_lengths.max()) // 8) * 8)  # pad dialogs to a multiple of 8

    key = jax.random.PRNGKey(0)
    keys = jax.random.split(key, 16)
    x = jax.random.normal(keys[0], (N, input_size), dtype=jnp.float32)
    speakers = jax.random.randint(keys[1], (N,), 0, 2)
    labels = jax.random.randint(keys[2], (N,), 0, n_classes)

    # pack utterances per dialog (zero-padded rows)
    x_np = np.asarray(x)
    x_pack = np.zeros((B, L_pad, input_size), np.float32)
    start = 0
    for b in range(B):
        L = int(dialog_lengths[b])
        x_pack[b, :L] = x_np[start:start + L]
        start += L

    a_cat, a_msg = build_intra_graph_packed(
        dialog_lengths, to_future_link, to_past_link, np.asarray(speakers), L_pad)

    def winit(k, shape, scale=0.1):
        return scale * jax.random.normal(k, shape, dtype=jnp.float32)

    params = {
        # RGCNConv(input_size, hidden_size, num_relations=2)
        "w_rel0": winit(keys[3], (input_size, hidden_size)),
        "w_rel1": winit(keys[4], (input_size, hidden_size)),
        "w_root_rgcn": winit(keys[5], (input_size, hidden_size)),
        "b_rgcn": winit(keys[6], (1, hidden_size)),
        # GraphConv(hidden_size, hidden_size)
        "w_rel_gc": winit(keys[7], (hidden_size, hidden_size)),
        "b_gc": winit(keys[8], (1, hidden_size)),
        "w_root_gc": winit(keys[9], (hidden_size, hidden_size)),
        # skip_con: Linear(input_size, hidden_size)
        "w_skip": winit(keys[10], (input_size, hidden_size)),
        "b_skip": winit(keys[11], (1, hidden_size)),
        # classify: Linear(hidden_size, n_classes)
        "w_cls": winit(keys[12], (hidden_size, n_classes)),
        "b_cls": winit(keys[13], (1, n_classes)),
    }

    x_pack_j = jnp.asarray(x_pack)
    a_cat_j = jnp.asarray(a_cat)
    a_msg_j = jnp.asarray(a_msg)

    out_pad = diagcn_forward(x_pack_j, a_cat_j, a_msg_j, params, n_classes)
    out_pad = jax.block_until_ready(out_pad)

    # gather valid rows back to [N, n_classes]
    rows = [out_pad[b, :int(dialog_lengths[b]), :n_classes] for b in range(B)]
    logits = jnp.concatenate(rows, axis=0)

    # nn.CrossEntropyLoss (mean reduction) over the N utterances (plain JAX glue)
    logp = jax.nn.log_softmax(logits, axis=-1)
    loss = -jnp.mean(jnp.take_along_axis(logp, labels[:, None], axis=1))
    loss = jax.block_until_ready(loss)

    # pure-JAX reference mirroring the kernel's bf16-operand / f32-accumulate math
    def ref(xp, ac, am, p):
        bf, f = jnp.bfloat16, jnp.float32
        dot = lambda u, v: jnp.dot(u, v, preferred_element_type=f)
        outs = []
        for b in range(xp.shape[0]):
            xb = xp[b].astype(bf)
            a0 = ac[b, :, :L_pad].astype(bf)
            a1 = ac[b, :, L_pad:].astype(bf)
            amb = am[b].astype(bf)
            xw0 = dot(xb, p["w_rel0"].astype(bf))
            xw1 = dot(xb, p["w_rel1"].astype(bf))
            xrt = dot(xb, p["w_root_rgcn"].astype(bf))
            xsk = dot(xb, p["w_skip"].astype(bf))
            h = xrt + dot(a0, xw0.astype(bf)) + dot(a1, xw1.astype(bf)) + p["b_rgcn"]
            hb = h.astype(bf)
            agg = dot(amb, hb)
            gs = (dot(agg.astype(bf), p["w_rel_gc"].astype(bf))
                  + dot(hb, p["w_root_gc"].astype(bf))
                  + xsk + p["b_gc"] + p["b_skip"])
            outs.append(dot(gs.astype(bf), p["w_cls"].astype(bf)) + p["b_cls"])
        return jnp.stack(outs, axis=0)

    ref_out = ref(x_pack_j, a_cat_j, a_msg_j, params)
    assert jnp.allclose(out_pad[:, :, :n_classes], ref_out, atol=2e-3, rtol=2e-3), \
        "kernel != reference"
    assert bool(jnp.isfinite(loss))
    print("KERNEL_OK")
</pallas_src>

<mosaic_0001>
module attributes {stable_mosaic.version = 11 : i64} {
  func.func @_diagcn_kernel(%arg0: i32, %arg1: memref<1x8x32xbf16, #tpu.memory_space<vmem>>, %arg2: memref<1x8x16xbf16, #tpu.memory_space<vmem>>, %arg3: memref<1x8x8xbf16, #tpu.memory_space<vmem>>, %arg4: memref<32x128xbf16, #tpu.memory_space<vmem>>, %arg5: memref<1x32xf32, #tpu.memory_space<vmem>>, %arg6: memref<32x32xbf16, #tpu.memory_space<vmem>>, %arg7: memref<32x32xbf16, #tpu.memory_space<vmem>>, %arg8: memref<1x32xf32, #tpu.memory_space<vmem>>, %arg9: memref<32x128xbf16, #tpu.memory_space<vmem>>, %arg10: memref<1x128xf32, #tpu.memory_space<vmem>>, %arg11: memref<1x8x128xf32, #tpu.memory_space<vmem>>) attributes {dimension_semantics = [#tpu.dimension_semantics<parallel>], iteration_bounds = array<i64: 2>, scalar_prefetch = 0 : i64, scratch_operands = 0 : i64, tpu.core_type = #tpu.core_type<tc>, window_params = [{transform_indices = @transform_0, window_bounds = array<i64: 1, 8, 32>}, {transform_indices = @transform_1, window_bounds = array<i64: 1, 8, 16>}, {transform_indices = @transform_2, window_bounds = array<i64: 1, 8, 8>}, {pipeline_mode = #tpu.pipeline_mode<synchronous>, transform_indices = @transform_3, window_bounds = array<i64: 32, 128>}, {pipeline_mode = #tpu.pipeline_mode<synchronous>, transform_indices = @transform_4, window_bounds = array<i64: 1, 32>}, {pipeline_mode = #tpu.pipeline_mode<synchronous>, transform_indices = @transform_5, window_bounds = array<i64: 32, 32>}, {pipeline_mode = #tpu.pipeline_mode<synchronous>, transform_indices = @transform_6, window_bounds = array<i64: 32, 32>}, {pipeline_mode = #tpu.pipeline_mode<synchronous>, transform_indices = @transform_7, window_bounds = array<i64: 1, 32>}, {pipeline_mode = #tpu.pipeline_mode<synchronous>, transform_indices = @transform_8, window_bounds = array<i64: 32, 128>}, {pipeline_mode = #tpu.pipeline_mode<synchronous>, transform_indices = @transform_9, window_bounds = array<i64: 1, 128>}, {transform_indices = @transform_10, window_bounds = array<i64: 1, 8, 128>}]} {
    %c0 = arith.constant 0 : index
    %c0_0 = arith.constant 0 : index
    %c0_1 = arith.constant 0 : index
    %0 = vector.load %arg1[%c0, %c0_0, %c0_1] : memref<1x8x32xbf16, #tpu.memory_space<vmem>>, vector<1x8x32xbf16>
    %1 = vector.shape_cast %0 : vector<1x8x32xbf16> to vector<8x32xbf16>
    %c0_2 = arith.constant 0 : index
    %c0_3 = arith.constant 0 : index
    %2 = vector.load %arg4[%c0_2, %c0_3] : memref<32x128xbf16, #tpu.memory_space<vmem>>, vector<32x128xbf16>
    %cst = arith.constant dense<0.000000e+00> : vector<8x128xf32>
    %3 = tpu.matmul %1, %2, %cst {dimension_numbers = #tpu.dot_dimension_numbers<[1], [0], [0], [1], [0, 0, 1, 1], [], []>} : vector<8x32xbf16>, vector<32x128xbf16>, vector<8x128xf32> -> vector<8x128xf32>
    %4 = vector.extract_strided_slice %3 {offsets = [0, 0], sizes = [8, 32], strides = [1, 1]} : vector<8x128xf32> to vector<8x32xf32>
    %5 = vector.extract_strided_slice %3 {offsets = [0, 32], sizes = [8, 32], strides = [1, 1]} : vector<8x128xf32> to vector<8x32xf32>
    %6 = tpu.concatenate %4, %5 in 0 : vector<8x32xf32>, vector<8x32xf32> -> vector<16x32xf32>
    %7 = arith.truncf %6 : vector<16x32xf32> to vector<16x32xbf16>
    %8 = vector.extract_strided_slice %3 {offsets = [0, 64], sizes = [8, 32], strides = [1, 1]} : vector<8x128xf32> to vector<8x32xf32>
    %9 = vector.extract_strided_slice %3 {offsets = [0, 96], sizes = [8, 32], strides = [1, 1]} : vector<8x128xf32> to vector<8x32xf32>
    %c0_4 = arith.constant 0 : index
    %c0_5 = arith.constant 0 : index
    %c0_6 = arith.constant 0 : index
    %10 = vector.load %arg2[%c0_4, %c0_5, %c0_6] : memref<1x8x16xbf16, #tpu.memory_space<vmem>>, vector<1x8x16xbf16>
    %11 = vector.shape_cast %10 : vector<1x8x16xbf16> to vector<8x16xbf16>
    %cst_7 = arith.constant dense<0.000000e+00> : vector<8x32xf32>
    %12 = tpu.matmul %11, %7, %cst_7 {dimension_numbers = #tpu.dot_dimension_numbers<[1], [0], [0], [1], [0, 0, 1, 1], [], []>} : vector<8x16xbf16>, vector<16x32xbf16>, vector<8x32xf32> -> vector<8x32xf32>
    %13 = arith.addf %8, %12 : vector<8x32xf32>
    %c0_8 = arith.constant 0 : index
    %c0_9 = arith.constant 0 : index
    %14 = vector.load %arg5[%c0_8, %c0_9] : memref<1x32xf32, #tpu.memory_space<vmem>>, vector<1x32xf32>
    %15 = vector.broadcast %14 : vector<1x32xf32> to vector<8x32xf32>
    %16 = arith.addf %13, %15 : vector<8x32xf32>
    %17 = arith.truncf %16 : vector<8x32xf32> to vector<8x32xbf16>
    %c0_10 = arith.constant 0 : index
    %c0_11 = arith.constant 0 : index
    %c0_12 = arith.constant 0 : index
    %18 = vector.load %arg3[%c0_10, %c0_11, %c0_12] : memref<1x8x8xbf16, #tpu.memory_space<vmem>>, vector<1x8x8xbf16>
    %19 = vector.shape_cast %18 : vector<1x8x8xbf16> to vector<8x8xbf16>
    %cst_13 = arith.constant dense<0.000000e+00> : vector<8x32xf32>
    %20 = tpu.matmul %19, %17, %cst_13 {dimension_numbers = #tpu.dot_dimension_numbers<[1], [0], [0], [1], [0, 0, 1, 1], [], []>} : vector<8x8xbf16>, vector<8x32xbf16>, vector<8x32xf32> -> vector<8x32xf32>
    %21 = arith.truncf %20 : vector<8x32xf32> to vector<8x32xbf16>
    %c0_14 = arith.constant 0 : index
    %c0_15 = arith.constant 0 : index
    %22 = vector.load %arg6[%c0_14, %c0_15] : memref<32x32xbf16, #tpu.memory_space<vmem>>, vector<32x32xbf16>
    %cst_16 = arith.constant dense<0.000000e+00> : vector<8x32xf32>
    %23 = tpu.matmul %21, %22, %cst_16 {dimension_numbers = #tpu.dot_dimension_numbers<[1], [0], [0], [1], [0, 0, 1, 1], [], []>} : vector<8x32xbf16>, vector<32x32xbf16>, vector<8x32xf32> -> vector<8x32xf32>
    %c0_17 = arith.constant 0 : index
    %c0_18 = arith.constant 0 : index
    %24 = vector.load %arg7[%c0_17, %c0_18] : memref<32x32xbf16, #tpu.memory_space<vmem>>, vector<32x32xbf16>
    %cst_19 = arith.constant dense<0.000000e+00> : vector<8x32xf32>
    %25 = tpu.matmul %17, %24, %cst_19 {dimension_numbers = #tpu.dot_dimension_numbers<[1], [0], [0], [1], [0, 0, 1, 1], [], []>} : vector<8x32xbf16>, vector<32x32xbf16>, vector<8x32xf32> -> vector<8x32xf32>
    %26 = arith.addf %23, %25 : vector<8x32xf32>
    %27 = arith.addf %26, %9 : vector<8x32xf32>
    %c0_20 = arith.constant 0 : index
    %c0_21 = arith.constant 0 : index
    %28 = vector.load %arg8[%c0_20, %c0_21] : memref<1x32xf32, #tpu.memory_space<vmem>>, vector<1x32xf32>
    %29 = vector.broadcast %28 : vector<1x32xf32> to vector<8x32xf32>
    %30 = arith.addf %27, %29 : vector<8x32xf32>
    %31 = arith.truncf %30 : vector<8x32xf32> to vector<8x32xbf16>
    %c0_22 = arith.constant 0 : index
    %c0_23 = arith.constant 0 : index
    %32 = vector.load %arg9[%c0_22, %c0_23] : memref<32x128xbf16, #tpu.memory_space<vmem>>, vector<32x128xbf16>
    %cst_24 = arith.constant dense<0.000000e+00> : vector<8x128xf32>
    %33 = tpu.matmul %31, %32, %cst_24 {dimension_numbers = #tpu.dot_dimension_numbers<[1], [0], [0], [1], [0, 0, 1, 1], [], []>} : vector<8x32xbf16>, vector<32x128xbf16>, vector<8x128xf32> -> vector<8x128xf32>
    %c0_25 = arith.constant 0 : index
    %c0_26 = arith.constant 0 : index
    %34 = vector.load %arg10[%c0_25, %c0_26] : memref<1x128xf32, #tpu.memory_space<vmem>>, vector<1x128xf32>
    %35 = vector.broadcast %34 : vector<1x128xf32> to vector<8x128xf32>
    %36 = arith.addf %33, %35 : vector<8x128xf32>
    %c0_27 = arith.constant 0 : index
    %c0_28 = arith.constant 0 : index
    %c0_29 = arith.constant 0 : index
    %37 = vector.load %arg11[%c0_27, %c0_28, %c0_29] : memref<1x8x128xf32, #tpu.memory_space<vmem>>, vector<1x8x128xf32>
    %38 = vector.shape_cast %37 : vector<1x8x128xf32> to vector<8x128xf32>
    %39 = vector.shape_cast %36 : vector<8x128xf32> to vector<1x8x128xf32>
    tpu.vector_store %arg11[%c0_27, %c0_28, %c0_29], %39 {strides = array<i32>} : memref<1x8x128xf32, #tpu.memory_space<vmem>>, vector<1x8x128xf32>,
    return
  }
  func.func @transform_0(%arg0: i32) -> (i32, i32, i32) {
    %c0_i32 = arith.constant 0 : i32
    %c0_i32_0 = arith.constant 0 : i32
    %c0_i32_1 = arith.constant 0 : i32
    return %arg0, %c0_i32, %c0_i32_0 : i32, i32, i32
  }
  func.func @transform_1(%arg0: i32) -> (i32, i32, i32) {
    %c0_i32 = arith.constant 0 : i32
    %c0_i32_0 = arith.constant 0 : i32
    %c0_i32_1 = arith.constant 0 : i32
    return %arg0, %c0_i32, %c0_i32_0 : i32, i32, i32
  }
  func.func @transform_2(%arg0: i32) -> (i32, i32, i32) {
    %c0_i32 = arith.constant 0 : i32
    %c0_i32_0 = arith.constant 0 : i32
    %c0_i32_1 = arith.constant 0 : i32
    return %arg0, %c0_i32, %c0_i32_0 : i32, i32, i32
  }
  func.func @transform_3(%arg0: i32) -> (i32, i32) {
    %c0_i32 = arith.constant 0 : i32
    %c0_i32_0 = arith.constant 0 : i32
    %c0_i32_1 = arith.constant 0 : i32
    return %c0_i32, %c0_i32_0 : i32, i32
  }
  func.func @transform_4(%arg0: i32) -> (i32, i32) {
    %c0_i32 = arith.constant 0 : i32
    %c0_i32_0 = arith.constant 0 : i32
    %c0_i32_1 = arith.constant 0 : i32
    return %c0_i32, %c0_i32_0 : i32, i32
  }
  func.func @transform_5(%arg0: i32) -> (i32, i32) {
    %c0_i32 = arith.constant 0 : i32
    %c0_i32_0 = arith.constant 0 : i32
    %c0_i32_1 = arith.constant 0 : i32
    return %c0_i32, %c0_i32_0 : i32, i32
  }
  func.func @transform_6(%arg0: i32) -> (i32, i32) {
    %c0_i32 = arith.constant 0 : i32
    %c0_i32_0 = arith.constant 0 : i32
    %c0_i32_1 = arith.constant 0 : i32
    return %c0_i32, %c0_i32_0 : i32, i32
  }
  func.func @transform_7(%arg0: i32) -> (i32, i32) {
    %c0_i32 = arith.constant 0 : i32
    %c0_i32_0 = arith.constant 0 : i32
    %c0_i32_1 = arith.constant 0 : i32
    return %c0_i32, %c0_i32_0 : i32, i32
  }
  func.func @transform_8(%arg0: i32) -> (i32, i32) {
    %c0_i32 = arith.constant 0 : i32
    %c0_i32_0 = arith.constant 0 : i32
    %c0_i32_1 = arith.constant 0 : i32
    return %c0_i32, %c0_i32_0 : i32, i32
  }
  func.func @transform_9(%arg0: i32) -> (i32, i32) {
    %c0_i32 = arith.constant 0 : i32
    %c0_i32_0 = arith.constant 0 : i32
    %c0_i32_1 = arith.constant 0 : i32
    return %c0_i32, %c0_i32_0 : i32, i32
  }
  func.func @transform_10(%arg0: i32) -> (i32, i32, i32) {
    %c0_i32 = arith.constant 0 : i32
    %c0_i32_0 = arith.constant 0 : i32
    %c0_i32_1 = arith.constant 0 : i32
    return %arg0, %c0_i32, %c0_i32_0 : i32, i32, i32
  }
}

</mosaic_0001>

<bundles_post_ra>
// kernel: tpu_custom_call.1
= control target key start
LH: loop header
LB: loop body
LE: loop exit
PB: predicated region body
PF: predicated region fallthrough
CT: control target
= control target key end

     0   :  { %s1930_s0 = inlined_call_operand.hbm [shape: bf16[2,8,32], index: 0, kind: input, shape index: {}]   ;;  %s1931_s1 = inlined_call_operand.hbm [shape: bf16[2,8,16], index: 1, kind: input, shape index: {}]   ;;  %s1932_s2 = inlined_call_operand.hbm [shape: bf16[2,8,8], index: 2, kind: input, shape index: {}]   ;;  %s1933_s3 = inlined_call_operand.hbm [shape: bf16[32,128], index: 3, kind: input, shape index: {}]   ;;  %s1934_s4 = inlined_call_operand.vmem [shape: f32[1,32], index: 4, kind: input, shape index: {}]   ;;  %s1935_s5 = inlined_call_operand.vmem [shape: bf16[32,32], index: 5, kind: input, shape index: {}]   ;;  %s1936_s6 = inlined_call_operand.hbm [shape: bf16[32,32], index: 6, kind: input, shape index: {}]   ;;  %s1937_s7 = inlined_call_operand.vmem [shape: f32[1,32], index: 7, kind: input, shape index: {}]   ;;  %s1938_s8 = inlined_call_operand.hbm [shape: bf16[32,128], index: 8, kind: input, shape index: {}]   ;;  %s1939_s9 = inlined_call_operand.vmem [shape: f32[1,128], index: 9, kind: input, shape index: {}]   ;;  %s1940_s10 = inlined_call_operand.hbm [shape: f32[2,8,128], index: 10, kind: output, shape index: {}]  }
   0x1   :  { %1966 = sst [smem:[#allocation25_spill]] %s1931_s1 }
   0x2   :  { %1967 = sst [smem:[#allocation26_spill]] %s1933_s3 }
   0x3   :  { %1968 = sst [smem:[#allocation27_spill]] %s1937_s7 }
   0x4   :  { %1969 = sst [smem:[#allocation28_spill]] %s1939_s9 }
   0x5   :  { %1970 = sst [smem:[#allocation29_spill]] %s1940_s10 }
   0x6   :  { %15 = vsyncpa [#allocation3], 0 }
   0x7   :  { %17 = vsyncpa [#allocation3 + $0x1], 0 }
   0x8   :  { %18 = vsyncpa [#allocation6], 0 }
   0x9   :  { %20 = vsyncpa [#allocation6 + $0x1], 0 }
   0xa   :  { %21 = vsyncpa [#allocation9], 0 }
   0xb   :  { %22 = vsyncpa [#allocation12], 0 }
   0xc   :  { %23 = vsyncpa [#allocation4], 0 }
   0xd   :  { %25 = vsyncpa [#allocation4 + $0x1], 0  ;;  %s1550_s13 = smov 0   ;;  %s1552_s14 = smov 0  }
   0xe   :  { %s1554_s15 = smov 0   ;;  %s1556_s16 = smov 0  }
   0xf LB: > { %1971 = sst [smem:[#allocation19_spill]] %s1467_s13  ;;  %s1571_s17 = sadd.s32 4294967295, %s1479_s16   ;;  %s1479_s16 = sphi %s1556_s16, %s2012_s16   ;;  %s1475_s15 = sphi %s1554_s15, %s2016_s15   ;;  %s1471_s14 = sphi %s1552_s14, %s2015_s14   ;;  %s1467_s13 = sphi %s1550_s13, %s2014_s13  }
  0x10   : > { %1972 = sst [smem:[#allocation20_spill]] %s1479_s16  ;;  %s1024_s18 = sadd.s32 4294967294, %s1479_s16  }
  0x11   : > { %p51_p0 = scmp.ne.s32.totalorder %s1471_s14, %s1467_s13  ;;  %p1942_p1 = scmp.eq.s32.totalorder %s1571_s17, 0 }
  0x12   : > { %p280_p3 = scmp.eq.s32.totalorder %s1024_s18, 1  ;;  %p1025_p5 = scmp.ge.s32.totalorder %s1479_s16, 1 }
  0x13   : > { %p1580_p4 = por %p1942_p1, %p51_p0  ;;  %p287_p7 = scmp.lt.s32.totalorder %s1479_s16, 3 }
  0x14   : > { %p1585_p6 = por %p280_p3, %p51_p0  ;;  %s1481_s22 = smov [#allocation8]  }
  0x15   : > { %s1973_s19 = scalar_select %p1580_p4, 1, 0 }
  0x16   : > { %s1974_s20 = scalar_select %p1585_p6, 1, 0 }
  0x17   : > { %p1590_p8 = pnand %p1025_p5, %p287_p7  ;;  %s299_s23 = sshll.u32 %s1481_s22, 4  ;;  %s1594_s23 = int_to_ptr.vmem [resolvable:$true] %s299_s23 }
  0x18   : > { %1975 = sst [smem:[#allocation21_spill]] %s1974_s20  ;;  %s1606_s25 = sadd.s32 1, %s1479_s16  }
  0x19   : > { %s1976_s21 = scalar_select %p1590_p8, 1, 0 }
  0x1a   : > { %p1145_p9 = pneg %p1590_p8  ;;  %1978 = sst [smem:[#allocation22_spill]] %s1606_s25 }
  0x1b   : > { %s38_s26 = sadd.s32 1, %s1475_s15  ;;  %s35_s27 = ssub.s32 %s1479_s16, %s1606_s25 }
  0x1c   : > { %p1601_p11 = pnand %p1145_p9, %p1942_p1  ;;  %s1979_s3 = sld [smem:[#allocation26_spill]] }
  0x1e   : > { %s1977_s24 = scalar_select %p1601_p11, 1, 0 }
  0x1f   : > { %p1619_p13 = pneg %p1601_p11 }
  0x21   : > { %s1980_s18 = scalar_select %p1619_p13, 1, 0 }
  0x22   : > { %s1227_s30 = scalar_lea.hbm %s1979_s3, 256 }
  0x23   : > { %p1228_p12 = scmp.ne.s32.totalorder %s1979_s3, %s1227_s30  ;;  %p1234_p5 = scmp.lt.u32.totalorder %s1227_s30, %s1979_s3 }
  0x25   : > { %p1230_p0 = pnand %p1619_p13, %p1228_p12 }
  0x27   : > { %p1231_p3 = pneg %p1230_p0 }
  0x29   : > { %p1236_p7 = pnand %p1234_p5, %p1231_p3 }
  0x2b   : > { %1239 = shalt.err (!%p1236_p7)
}
  0x2c   : > { %s1240_s28 = scalar_lea.vmem %s1594_s23, 256  ;;  %p1248_p2 = scmp.lt.s32.totalorder %s1594_s23, %s1594_s23 }
  0x2d   : > { %p1241_p9 = scmp.ne.s32.totalorder %s1594_s23, %s1240_s28  ;;  %p1249_p6 = scmp.lt.s32.totalorder %s1240_s28, %s1240_s28 }
  0x2f   : > { %p1243_p10 = pnand %p1241_p9, %p1619_p13  ;;  %p1250_p12 = por %p1249_p6, %p1248_p2 }
  0x31   : > { %p1244_p1 = pneg %p1243_p10 }
  0x33   : > { %p1251_p0 = pnand %p1250_p12, %p1244_p1 }
  0x35   : > { %1254 = shalt.err (!%p1251_p0)
}
  0x36   : > { %s1946_s29 = smov 64   ;;  %s1948_s20 = smov 4  }
  0x37   : > { %1148 = dma.hbm_to_vmem [thread:$0]  (!%p1601_p11), %s1979_s3, 256, %s1594_s23, [#allocation9], %s1946_s29, %s1946_s29, %s1948_s20  }
  0x38   : > { %p36_p1 = scmp.eq.s32.totalorder %s35_s27, 0  ;;  %p45_p2 = scmp.ne.s32.totalorder %s1475_s15, %s1471_s14 }
  0x39   : > { %p46_p6 = scmp.eq.s32.totalorder %s1479_s16, 0  ;;  %p1172_p10 = scmp.lt.s32.totalorder %s1479_s16, 2 }
  0x3a   : > { %s1648_s12 = scalar_select %p36_p1, %s1475_s15, %s38_s26  }
  0x3b   : > { %p47_p3 = por %p46_p6, %p45_p2  ;;  %p1982_p5 = scmp.eq.s32.totalorder %s1571_s17, 1 }
  0x3c   : > { %1981 = sst [smem:[#allocation23_spill]] %s1648_s12  ;;  %s1950_s28 = sand.u32 1, %s1475_s15  }
  0x3d   : > { %p1652_p7 = por %p1982_p5, %p45_p2  ;;  %s1658_s25 = sshll.u32 %s1479_s16, 6 }
  0x3e   : > { %s1662_s13 = sshll.u32 %s1950_s28, 2  ;;  %p1664_p9 = pnand %p1172_p10, %p47_p3 }
  0x3f   : > { %s1983_s22 = scalar_select %p1652_p7, 1, 0 }
  0x40   : > { %s1985_s23 = scalar_select %p1664_p9, 1, 0 }
  0x41   : > { %1984 = sst [smem:[#allocation24_spill]] %s1983_s22  ;;  %s369_s26 = sand.u32 1, %s1479_s16  }
  0x42   : > { %s1986_s1 = sld [smem:[#allocation25_spill]]  ;;  %s373_s29 = scalar_lea.vmem [#allocation5], %s1662_s13 }
  0x43   : > { %s380_s20 = sshll.u32 %s373_s29, 4  ;;  %s1678_s28 = scalar_lea.sflag [#allocation6], %s369_s26  ;;  %s1676_s20 = int_to_ptr.vmem [resolvable:$true] %s380_s20 }
  0x44   : > { %p1684_p0 = pneg %p1664_p9 }
  0x46   : > { %s1987_s12 = scalar_select %p1684_p0, 1, 0 }
  0x48   : > { %s1673_s11 = scalar_lea.hbm %s1986_s1, %s1658_s25  ;;  %s1260_s16 = scalar_lea.hbm %s1986_s1, 128 }
  0x49   : > { %s1255_s3 = scalar_lea.hbm %s1673_s11, 64  ;;  %p1261_p6 = scmp.lt.u32.totalorder %s1673_s11, %s1986_s1 }
  0x4a   : > { %p1256_p12 = scmp.ne.s32.totalorder %s1673_s11, %s1255_s3  ;;  %p1262_p10 = scmp.lt.u32.totalorder %s1260_s16, %s1255_s3 }
  0x4b   : > { %p1264_p5 = scmp.lt.u32.totalorder %s1255_s3, %s1673_s11 }
  0x4c   : > { %p1258_p1 = pnand %p1684_p0, %p1256_p12  ;;  %p1263_p3 = por %p1262_p10, %p1261_p6 }
  0x4e   : > { %p1259_p2 = pneg %p1258_p1  ;;  %p1265_p7 = por %p1264_p5, %p1263_p3 }
  0x50   : > { %p1266_p4 = pnand %p1265_p7, %p1259_p2 }
  0x52   : > { %1269 = shalt.err (!%p1266_p4)
}
  0x53   : > { %s1270_s26 = scalar_lea.vmem %s1676_s20, 64  ;;  %s1484_s27 = smov [#allocation5]  }
  0x54   : > { %p1271_p12 = scmp.ne.s32.totalorder %s1676_s20, %s1270_s26  ;;  %s1275_s30 = sshll.u32 %s1484_s27, 4  ;;  %s1276_s30 = int_to_ptr.vmem [resolvable:$false] %s1275_s30 }
  0x55   : > { %s1277_s10 = scalar_lea.vmem %s1276_s30, 128  ;;  %p1278_p11 = scmp.lt.s32.totalorder %s1676_s20, %s1276_s30 }
  0x56   : > { %p1273_p1 = pnand %p1271_p12, %p1684_p0  ;;  %p1279_p13 = scmp.lt.s32.totalorder %s1277_s10, %s1270_s26 }
  0x58   : > { %p1274_p8 = pneg %p1273_p1  ;;  %p1280_p6 = por %p1279_p13, %p1278_p11 }
  0x5a   : > { %p1281_p10 = pnand %p1280_p6, %p1274_p8 }
  0x5c   : > { %1284 = shalt.err (!%p1281_p10)
}
  0x5d   : > { %1161 = dma.hbm_to_vmem [thread:$0]  (!%p1664_p9), %s1673_s11, 64, %s1676_s20, %s1678_s28  }
  0x5e   : > { %s1485_s3 = smov [#allocation10]   ;;  %s1486_s29 = smov [#allocation11]  }
  0x5f   : > { %s318_s16 = sshll.u32 %s1485_s3, 4  ;;  %s334_s1 = sshll.u32 %s1486_s29, 4  ;;  %s319_s16 = int_to_ptr.vmem [resolvable:$true] %s318_s16  ;;  %s335_s1 = int_to_ptr.vmem [resolvable:$true] %s334_s1 }
  0x60   : > { %s1285_s30 = scalar_lea.hbm %s1936_s6, 256  ;;  %p1988_p8 = scmp.ne.s32.totalorder %s1980_s18, 0 }
  0x61   : > { %p1286_p4 = scmp.ne.s32.totalorder %s1936_s6, %s1285_s30  ;;  %p1292_p7 = scmp.lt.u32.totalorder %s1285_s30, %s1936_s6 }
  0x63   : > { %p1288_p11 = pnand %p1286_p4, %p1988_p8 }
  0x65   : > { %p1289_p13 = pneg %p1288_p11 }
  0x67   : > { %p1294_p2 = pnand %p1292_p7, %p1289_p13 }
  0x69   : > { %1297 = shalt.err (!%p1294_p2)
}
  0x6a   : > { %s1298_s20 = scalar_lea.vmem %s319_s16, 256  ;;  %p1306_p1 = scmp.lt.s32.totalorder %s319_s16, %s319_s16 }
  0x6b   : > { %p1299_p3 = scmp.ne.s32.totalorder %s319_s16, %s1298_s20  ;;  %p1307_p6 = scmp.lt.s32.totalorder %s1298_s20, %s1298_s20 }
  0x6d   : > { %p1301_p5 = pnand %p1299_p3, %p1988_p8  ;;  %p1308_p10 = por %p1307_p6, %p1306_p1 }
  0x6f   : > { %p1302_p12 = pneg %p1301_p5 }
  0x71   : > { %p1309_p9 = pnand %p1308_p10, %p1302_p12 }
  0x73   : > { %1312 = shalt.err (!%p1309_p9)
}
  0x74   : > { %p1989_p4 = scmp.ne.s32.totalorder %s1977_s24, 0  ;;  %s1990_s22 = smov 4  }
  0x75   : > { %s1991_s11 = smov 64   ;;  %s1313_s27 = scalar_lea.hbm %s1938_s8, 256 }
  0x76   : > { %1151 = dma.hbm_to_vmem [thread:$0]  (!%p1989_p4), %s1936_s6, 256, %s319_s16, [#allocation9], %s1991_s11, %s1991_s11, %s1990_s22  }
  0x77   : > { %p1314_p11 = scmp.ne.s32.totalorder %s1938_s8, %s1313_s27  ;;  %p1320_p7 = scmp.lt.u32.totalorder %s1313_s27, %s1938_s8 }
  0x79   : > { %p1316_p9 = pnand %p1314_p11, %p1988_p8 }
  0x7b   : > { %p1317_p13 = pneg %p1316_p9 }
  0x7d   : > { %p1322_p2 = pnand %p1320_p7, %p1317_p13 }
  0x7f   : > { %1325 = shalt.err (!%p1322_p2)
}
  0x80   : > { %s1326_s7 = scalar_lea.vmem %s335_s1, 256  ;;  %p1334_p1 = scmp.lt.s32.totalorder %s335_s1, %s335_s1 }
  0x81   : > { %p1327_p3 = scmp.ne.s32.totalorder %s335_s1, %s1326_s7  ;;  %p1335_p6 = scmp.lt.s32.totalorder %s1326_s7, %s1326_s7 }
  0x83   : > { %p1329_p5 = pnand %p1327_p3, %p1988_p8  ;;  %p1336_p10 = por %p1335_p6, %p1334_p1 }
  0x85   : > { %p1330_p12 = pneg %p1329_p5 }
  0x87   : > { %p1337_p0 = pnand %p1336_p10, %p1330_p12 }
  0x89   : > { %1340 = shalt.err (!%p1337_p0)
}
  0x8a   : > { %1154 = dma.hbm_to_vmem [thread:$0]  (!%p1989_p4), %s1938_s8, 256, %s335_s1, [#allocation12], %s1991_s11, %s1991_s11, %s1990_s22  }
  0x8b   : > { %s1754_s29 = scalar_lea.hbm %s1930_s0, %s1658_s25  ;;  %s355_s24 = scalar_lea.vmem [#allocation2], %s1662_s13 }
  0x8c   : > { %s362_s27 = sshll.u32 %s355_s24, 4  ;;  %s1763_s10 = scalar_lea.hbm %s1932_s2, %s1658_s25  ;;  %s1757_s27 = int_to_ptr.vmem [resolvable:$true] %s362_s27 }
  0x8d   : > { %s1992_s20 = sand.u32 1, %s1475_s15   ;;  %s1341_s22 = scalar_lea.hbm %s1754_s29, 64 }
  0x8e   : > { %s352_s1 = scalar_lea.sflag [#allocation3], %s1992_s20  ;;  %p1342_p0 = scmp.ne.s32.totalorder %s1754_s29, %s1341_s22 }
  0x8f   : > { %p1993_p8 = scmp.ne.s32.totalorder %s1987_s12, 0  ;;  %s1346_s16 = scalar_lea.hbm %s1930_s0, 128 }
  0x90   : > { %p1347_p9 = scmp.lt.u32.totalorder %s1754_s29, %s1930_s0  ;;  %p1348_p13 = scmp.lt.u32.totalorder %s1346_s16, %s1341_s22 }
  0x91   : > { %p1344_p4 = pnand %p1342_p0, %p1993_p8  ;;  %p1350_p2 = scmp.lt.u32.totalorder %s1341_s22, %s1754_s29 }
  0x92   : > { %p1349_p7 = por %p1348_p13, %p1347_p9 }
  0x93   : > { %p1345_p11 = pneg %p1344_p4 }
  0x94   : > { %p1351_p3 = por %p1350_p2, %p1349_p7 }
  0x96   : > { %p1352_p5 = pnand %p1351_p3, %p1345_p11 }
  0x98   : > { %1355 = shalt.err (!%p1352_p5)
}
  0x99   : > { %s1356_s25 = scalar_lea.vmem %s1757_s27, 64  ;;  %s1487_s3 = smov [#allocation2]  }
  0x9a   : > { %p1357_p12 = scmp.ne.s32.totalorder %s1757_s27, %s1356_s25  ;;  %s1361_s24 = sshll.u32 %s1487_s3, 4  ;;  %s1362_s24 = int_to_ptr.vmem [resolvable:$false] %s1361_s24 }
  0x9b   : > { %s1363_s30 = scalar_lea.vmem %s1362_s24, 128  ;;  %p1364_p10 = scmp.lt.s32.totalorder %s1757_s27, %s1362_s24 }
  0x9c   : > { %p1359_p1 = pnand %p1357_p12, %p1993_p8  ;;  %p1365_p0 = scmp.lt.s32.totalorder %s1363_s30, %s1356_s25 }
  0x9e   : > { %p1360_p6 = pneg %p1359_p1  ;;  %p1366_p4 = por %p1365_p0, %p1364_p10 }
  0xa0   : > { %p1367_p9 = pnand %p1366_p4, %p1360_p6 }
  0xa2   : > { %1370 = shalt.err (!%p1367_p9)
}
  0xa3   : > { %p1994_p11 = scmp.ne.s32.totalorder %s1985_s23, 0  ;;  %s391_s26 = scalar_lea.vmem [#allocation7], %s1662_s13 }
  0xa4   : > { %s398_s20 = sshll.u32 %s391_s26, 4  ;;  %s1371_s22 = scalar_lea.hbm %s1763_s10, 64  ;;  %s399_s20 = int_to_ptr.vmem [resolvable:$true] %s398_s20 }
  0xa5   : > { %1158 = dma.hbm_to_vmem [thread:$0]  (!%p1994_p11), %s1754_s29, 64, %s1757_s27, %s352_s1  }
  0xa6   : > { %p1372_p13 = scmp.ne.s32.totalorder %s1763_s10, %s1371_s22  ;;  %s1376_s16 = scalar_lea.hbm %s1932_s2, 128 }
  0xa7   : > { %p1377_p3 = scmp.lt.u32.totalorder %s1763_s10, %s1932_s2  ;;  %p1378_p5 = scmp.lt.u32.totalorder %s1376_s16, %s1371_s22 }
  0xa8   : > { %p1374_p7 = pnand %p1372_p13, %p1993_p8  ;;  %p1380_p1 = scmp.lt.u32.totalorder %s1371_s22, %s1763_s10 }
  0xa9   : > { %p1379_p12 = por %p1378_p5, %p1377_p3 }
  0xaa   : > { %p1375_p2 = pneg %p1374_p7 }
  0xab   : > { %p1381_p6 = por %p1380_p1, %p1379_p12 }
  0xad   : > { %p1382_p10 = pnand %p1381_p6, %p1375_p2 }
  0xaf   : > { %1385 = shalt.err (!%p1382_p10)
}
  0xb0   : > { %s1386_s13 = scalar_lea.vmem %s399_s20, 64  ;;  %s1488_s29 = smov [#allocation7]  }
  0xb1   : > { %p1387_p0 = scmp.ne.s32.totalorder %s399_s20, %s1386_s13  ;;  %s1391_s27 = sshll.u32 %s1488_s29, 4  ;;  %s1392_s27 = int_to_ptr.vmem [resolvable:$false] %s1391_s27 }
  0xb2   : > { %s1393_s1 = scalar_lea.vmem %s1392_s27, 128  ;;  %p1394_p13 = scmp.lt.s32.totalorder %s399_s20, %s1392_s27 }
  0xb3   : > { %p1389_p4 = pnand %p1387_p0, %p1993_p8  ;;  %p1395_p7 = scmp.lt.s32.totalorder %s1393_s1, %s1386_s13 }
  0xb5   : > { %p1390_p9 = pneg %p1389_p4  ;;  %p1396_p11 = por %p1395_p7, %p1394_p13 }
  0xb7   : > { %p1397_p3 = pnand %p1396_p11, %p1390_p9 }
  0xb9   : > { %1400 = shalt.err (!%p1397_p3)
}
  0xba   : > { %p1995_p5 = scmp.ne.s32.totalorder %s1985_s23, 0  ;;  %p1996_p2 = scmp.ne.s32.totalorder %s1976_s21, 0 }
  0xbb   : > { %s1810_s12 = sand.u32 (!%p1996_p2), 1, %s1471_s14   ;;  %p1997_p8 = scmp.ne.s32.totalorder (!%p1996_p2), %s1973_s19, 0 }
  0xbc   : > { %1164 = dma.hbm_to_vmem [thread:$0]  (!%p1995_p5), %s1763_s10, 64, %s399_s20, %s1678_s28  }
  0xbd   : > { %407 = sbr.rel (%p1996_p2) target bundleno = 1662 (0x67e), region = 60  ;;  %s1813_s25 = sshll.u32 (!%p1996_p2), %s1810_s12, 2 }
  0xbe   : > { %s410_s3 = scalar_lea.sflag (!%p1996_p2), [#allocation3], %s1810_s12  ;;  %s413_s24 = scalar_lea.vmem (!%p1996_p2), [#allocation2], %s1813_s25 }
  0xc4   : > { %1446 = dma.done.wait (%p1997_p8), %s410_s3, 64  }
  0xc5   : > { %1448 = vsyncadd (%p1997_p8), %s410_s3, 4294967232  ;;  %s418_s21 = sand.u32 1, %s1571_s17   ;;  %s422_s23 = scalar_lea.vmem [#allocation5], %s1813_s25 }
  0xc6   : > { %s419_s28 = scalar_lea.sflag [#allocation6], %s418_s21 }
  0xc7   : > { %1450 = dma.done.wait (%p1997_p8), %s419_s28, 128  }
  0xc8   : > { %1452 = vsyncadd (%p1997_p8), %s419_s28, 4294967168  ;;  %s431_s10 = scalar_lea.vmem [#allocation7], %s1813_s25  ;;  %p1998_p11 = scmp.eq.s32.totalorder %s1571_s17, 0 }
  0xca   : > { %1454 = dma.done.wait (%p1998_p11), [#allocation9], 512   ;;  %p1999_p12 = pmov %p1998_p11 }
  0xcb   : > { %p2000_p1 = pmov %p1998_p11 }
  0xcc   : > { %1456 = vsyncadd (%p1999_p12), [#allocation9], 4294966784 }
  0xcd   : > { %1458 = dma.done.wait (%p2000_p1), [#allocation12], 256   ;;  %p2001_p6 = pmov %p2000_p1 }
  0xce   : > { %v1489_v0 = vmov 0.0   ;;  %vm1490_vm0 = vmmov 0   ;;  %v1219_v1 = vld [vmem:[#allocation8] sm:$0xff]   ;;  %v1220_v2 = vld [vmem:[#allocation8 + $0x8] sm:$0xff]   ;;  %vm508_vm1 = vcmask 261120   ;;  %s1491_s19 = smov 96  }
  0xcf   : > { %1460 = vsyncadd (%p2001_p6), [#allocation12], 4294967040  ;;  %1081 = vmatprep.subr.bf16.mxu0 %v1489_v0  ;;  %1085 = vmatprep.mubr.msk.bf16.mxu0 %vm1490_vm0, %v1489_v0  ;;  %v491_v3 = vld [vmem:[%s413_s24] sm:$0xf]  ;;  %v557_v10 = vld [vmem:[%s422_s23] sm:$0xf] }
  0xd0   : > { %1089 = vmatprep.subr.bf16.mxu1 %v1489_v0  ;;  %1091 = vmatprep.mubr.msk.bf16.mxu1 %vm1490_vm0, %v1489_v0  ;;  %vm558_vm2 = vcmask 130048   ;;  %v1048_v11 = vld [vmem:[%s1934_s4] ss:$0 sm:$0xff]  ;;  %s1492_s20 = smov 64   ;;  %v1221_v12 = vld [vmem:[#allocation10] sm:$0xff]   ;;  %s1493_s22 = smov 32  }
  0xd1   : > { %1082 = vmatpush3.bf16.msra.mxu0 %v1219_v1  ;;  %613 = vrot.lane.b32.xlu1 %v1048_v11, %s1492_s20  ;;  %v1222_v13 = vld [vmem:[#allocation10 + $0x8] sm:$0xff]   ;;  %vm626_vm3 = vcmask 1043456   ;;  %vm622_vm4 = vcmask 64512   ;;  %v1224_v27 = vld [vmem:[%s1935_s5 + $0x8] sm:$0xff]   ;;  %v1226_v38 = vld [vmem:[#allocation11 + $0x8] sm:$0xff]   ;;  %s2002_s29 = sld [smem:[#allocation27_spill]] }
  0xd2   : > { %1083 = vmatprep.subr.bf16.mxu0 %v1489_v0  ;;  %v618_v25 = vld [vmem:[%s431_s10] sm:$0xf]  ;;  %v1225_v37 = vld [vmem:[#allocation11] sm:$0xff]   ;;  %s1043_s27 = sshll.u32 %s1810_s12, 3  ;;  %s2003_s3 = sld [smem:[#allocation28_spill]] }
  0xd3   : > { %v1223_v26 = vld [vmem:[%s1935_s5] sm:$0xff]   ;;  %s2004_s24 = sld [smem:[#allocation24_spill]]  ;;  %s1062_s21 = sshll.u32 %s1571_s17, 7 }
  0xd4   : > { %s489_s28 = scalar_lea.vmem [#allocation13], %s1043_s27  ;;  %s2005_s30 = sld [smem:[#allocation29_spill]] }
  0xd5   : > { %1084 = vmatpush3.bf16.msra.mxu0 %v1220_v2  ;;  %s882_s23 = sshll.u32 %s489_s28, 4  ;;  %s1888_s23 = int_to_ptr.vmem [resolvable:$true] %s882_s23 }
  0xd6   : > { %1101 = vmatprep.subr.bf16.mxu0 %v1489_v0  ;;  %s1401_s17 = scalar_lea.vmem %s1888_s23, 128 }
  0xd7   : > { %v1056_v43 = vld [vmem:[%s2002_s29] ss:$0 sm:$0xff]  ;;  %p1402_p10 = scmp.ne.s32.totalorder %s1888_s23, %s1401_s17 }
  0xd8   : > { %1086 = vmatmul.mubr.msk.bf16.vlgmr.msra.gmra.mrb[0].mxu0 %vm508_vm1, %v491_v3  ;;  %v1057_v49 = vld [vmem:[%s2003_s3] ss:$0 sm:$0xff] }
  0xd9   : > { %1105 = vmatprep.mubr.msk.bf16.mxu0 %vm1490_vm0, %v1489_v0  ;;  %1102 = vmatpush3.bf16.msra.mxu0 %v1221_v12  ;;  %p2006_p0 = scmp.ne.s32.totalorder %s2004_s24, 0 }
  0xda   : > { %1103 = vmatprep.subr.bf16.mxu0 %v1489_v0  ;;  %s1886_s26 = scalar_lea.hbm %s2005_s30, %s1062_s21 }
  0xdb   : > { %p1403_p4 = pnand %p1402_p10, %p2006_p0 }
  0xdd   : > { %1104 = vmatpush3.bf16.msra.mxu0 %v1222_v13  ;;  %p1404_p9 = pneg %p1403_p4 }
  0xde   : > { %1117 = vmatprep.subr.bf16.mxu0 %v1489_v0 }
 0x143   : > { %v614_v19 = vpop.permute.xlu1 %613 }
 0x1ab   : > { %v546_v4 = vpop.f32.mrb[0].mxu0 }
 0x1ac   : > { %553 = vrot.lane.b32.xlu0 %v546_v4, %s1491_s19  ;;  %v1087_v5 = vpop.f32.mrb[1].mxu0 }
 0x1ad   : > { %v549_v6 = vpop.f32.mrb[2].mxu0 }
 0x1ae   : > { %v1088_v7 = vpop.f32.mrb[3].mxu0 }
 0x21e   : > { %v554_v8 = vpop.permute.xlu0 %553 }
 0x21f   : > { %v556_v9 = vpack.c.bf16 %v554_v8, %v546_v4 }
 0x221   : > { %1090 = vmatpush3.bf16.msra.mxu1 %v556_v9 }
 0x222   : > { %1095 = vmatprep.subr.bf16.mxu1 %v1489_v0 }
 0x224   : > { %1092 = vmatmul.mubr.msk.bf16.vlgmr.msra.gmra.mrb[0].mxu1 %vm558_vm2, %v557_v10 }
 0x225   : > { %1097 = vmatprep.mubr.msk.bf16.mxu1 %vm1490_vm0, %v1489_v0 }
 0x2f7   : > { %v596_v14 = vpop.f32.mrb[0].mxu1 }
 0x2f8   : > { %603 = vrot.lane.b32.xlu0 %v596_v14, %s1492_s20  ;;  %v1093_v15 = vpop.f32.mrb[1].mxu1 }
 0x2f9   : > { %v599_v16 = vpop.f32.mrb[2].mxu1 }
 0x2fa   : > { %v1094_v17 = vpop.f32.mrb[3].mxu1 }
 0x2fc   : > { %788 = vrot.lane.b32.xlu0 %v546_v4, %s1493_s22  ;;  %s1494_s22 = smov [#allocation13]  }
 0x2fd   : > { %s1405_s11 = sshll.u32 %s1494_s22, 4  ;;  %s1406_s11 = int_to_ptr.vmem [resolvable:$false] %s1405_s11 }
 0x2fe   : > { %s1407_s7 = scalar_lea.vmem %s1406_s11, 256  ;;  %p1408_p13 = scmp.lt.s32.totalorder %s1888_s23, %s1406_s11 }
 0x2ff   : > { %p1409_p7 = scmp.lt.s32.totalorder %s1407_s7, %s1401_s17 }
 0x301   : > { %p1410_p3 = por %p1409_p7, %p1408_p13 }
 0x303   : > { %p1411_p5 = pnand %p1410_p3, %p1404_p9 }
 0x36a   : > { %v604_v18 = vpop.permute.xlu0 %603 }
 0x36b   : > { %v606_v20 = vadd.f32 %v604_v18, %v546_v4 }
 0x36d   : > { %v616_v21 = vadd.f32 %v614_v19, %v606_v20 }
 0x36e   : > { %v789_v42 = vpop.permute.xlu0 %788 }
 0x36f   : > { %v617_v22 = vpack.c.bf16 %v616_v21, %v616_v21 }
 0x371   : > { %620 = vrot.lane.b32.xlu1 %v617_v22, %s1492_s20  ;;  %s869_s20 = scalar_lea.sflag [#allocation4], %s1810_s12 }
 0x3e3   : > { %v621_v23 = vpop.permute.xlu1 %620 }
 0x3e4   : > { %v628_v24 = vsel %vm626_vm3, %v621_v23, 0  ;;  %1106 = vmatmul.mubr.msk.bf16.vlgmr.msra.gmra.mrb[4].mxu0 %vm508_vm1, %v621_v23 }
 0x3e5   : > { %1096 = vmatpush3.bf16.msra.mxu1 %v628_v24  ;;  %1121 = vmatprep.mubr.msk.bf16.mxu0 %vm1490_vm0, %v1489_v0 }
 0x3e6   : > { %1109 = vmatprep.subr.bf16.mxu1 %v1489_v0  ;;  %1118 = vmatpush3.bf16.msra.mxu0 %v1225_v37 }
 0x3e7   : > { %1119 = vmatprep.subr.bf16.mxu0 %v1489_v0 }
 0x3e8   : > { %1098 = vmatmul.mubr.msk.bf16.vlgmr.msra.gmra.mrb[4].mxu1 %vm622_vm4, %v618_v25 }
 0x3e9   : > { %1113 = vmatprep.mubr.msk.bf16.mxu1 %vm1490_vm0, %v1489_v0  ;;  %1110 = vmatpush3.bf16.msra.mxu1 %v1223_v26 }
 0x3ea   : > { %1111 = vmatprep.subr.bf16.mxu1 %v1489_v0  ;;  %1120 = vmatpush3.bf16.msra.mxu0 %v1226_v38 }
 0x3ed   : > { %1112 = vmatpush3.bf16.msra.mxu1 %v1224_v27 }
 0x4b7   : > { %v727_v28 = vpop.f32.mrb[4].mxu0 }
 0x4b8   : > { %v1107_v29 = vpop.f32.mrb[5].mxu0 }
 0x4b9   : > { %v730_v30 = vpop.f32.mrb[6].mxu0 }
 0x4ba   : > { %v1108_v31 = vpop.f32.mrb[7].mxu0 }
 0x4bb   : > { %v664_v32 = vpop.f32.mrb[4].mxu1 }
 0x4bc   : > { %v670_v33 = vpack.c.bf16 %v664_v32, %v664_v32  ;;  %v1099_v34 = vpop.f32.mrb[5].mxu1 }
 0x4bd   : > { %v667_v35 = vpop.f32.mrb[6].mxu1 }
 0x4be   : > { %1114 = vmatmul.mubr.msk.bf16.vlgmr.msra.gmra.mrb[8].mxu1 %vm508_vm1, %v670_v33  ;;  %v1100_v36 = vpop.f32.mrb[7].mxu1 }
 0x591   : > { %v782_v39 = vpop.f32.mrb[8].mxu1 }
 0x592   : > { %v783_v40 = vadd.f32 %v782_v39, %v727_v28  ;;  %v1115_v41 = vpop.f32.mrb[9].mxu1 }
 0x593   : > { %v785_v44 = vpop.f32.mrb[10].mxu1 }
 0x594   : > { %v791_v45 = vadd.f32 %v789_v42, %v783_v40  ;;  %v1116_v46 = vpop.f32.mrb[11].mxu1 }
 0x596   : > { %v799_v47 = vadd.f32 %v1056_v43, %v791_v45 }
 0x598   : > { %v800_v48 = vpack.c.bf16 %v799_v47, %v799_v47 }
 0x59a   : > { %1122 = vmatmul.mubr.msk.bf16.vlgmr.msra.gmra.mrb[8].mxu0 %vm508_vm1, %v800_v48 }
 0x66d   : > { %v861_v50 = vpop.f32.mrb[8].mxu0 }
 0x66e   : > { %v862_v51 = vadd.f32 %v1057_v49, %v861_v50  ;;  %v1123_v52 = vpop.f32.mrb[9].mxu0 }
 0x66f   : > { %v864_v53 = vpop.f32.mrb[10].mxu0 }
 0x670   : > { %867 = vst [vmem:[%s489_s28] sm:$0xff] %v862_v51  ;;  %v1124_v54 = vpop.f32.mrb[11].mxu0 }
 0x671   : > { %1414 = shalt.err (!%p1411_p5)
}
 0x672   : > { %s1415_s12 = scalar_lea.hbm %s1886_s26, 128  ;;  %s1419_s18 = scalar_lea.hbm %s2005_s30, 256 }
 0x673   : > { %p1416_p2 = scmp.ne.s32.totalorder %s1886_s26, %s1415_s12  ;;  %p1420_p12 = scmp.lt.u32.totalorder %s1886_s26, %s2005_s30 }
 0x674   : > { %p1421_p1 = scmp.lt.u32.totalorder %s1419_s18, %s1415_s12  ;;  %p1423_p10 = scmp.lt.u32.totalorder %s1415_s12, %s1886_s26 }
 0x675   : > { %p1417_p8 = pnand %p1416_p2, %p2006_p0 }
 0x676   : > { %p1422_p6 = por %p1421_p1, %p1420_p12 }
 0x677   : > { %p1418_p11 = pneg %p1417_p8 }
 0x678   : > { %p1424_p4 = por %p1423_p10, %p1422_p6 }
 0x67a   : > { %p1425_p9 = pnand %p1424_p4, %p1418_p11 }
 0x67c   : > { %1428 = shalt.err (!%p1425_p9)
}
 0x67d   : > { %1143 = dma.vmem_to_hbm [thread:$0]  (%p2006_p0), %s1888_s23, 128, %s1886_s26, %s869_s20  }
 0x67e PF: > { %s2007_s27 = sld [smem:[#allocation19_spill]]  ;;  %s2008_s1 = sld [smem:[#allocation21_spill]] }
 0x67f   : > { %s2009_s25 = sld [smem:[#allocation20_spill]] }
 0x684   : > { %s894_s3 = sand.u32 1, %s2007_s27   ;;  %p2010_p13 = scmp.ne.s32.totalorder %s2008_s1, 0 }
 0x685   : > { %p2011_p7 = scmp.ge.s32.totalorder %s2009_s25, 2  ;;  %s895_s21 = scalar_lea.sflag [#allocation4], %s894_s3 }
 0x687   : > { %p1166_p3 = pnand %p2011_p7, %p2010_p13 }
 0x689   : > { %1462 = dma.done.wait (!%p1166_p3), %s895_s21, 128  }
 0x68a   : > { %1464 = vsyncadd (!%p1166_p3), %s895_s21, 4294967168  ;;  %s2012_s16 = sld [smem:[#allocation22_spill]]  ;;  %s2013_s28 = sld [smem:[#allocation23_spill]] }
 0x68b   : > { %s2014_s13 = smov %s1471_s14  ;;  %s2015_s14 = smov %s1475_s15 }
 0x690   : > { %p28_p5 = scmp.ge.s32.totalorder %s2012_s16, 4   ;;  %s2016_s15 = smov %s2013_s28 }
 0x692   :  { %30 = sbr.rel (!%p28_p5) target bundleno = 15 (0xf), region = 141 }
 0x699   :  { %900 = vsyncpa [#allocation3], 1 }
 0x69a   :  { %902 = vsyncpa [#allocation3 + $0x1], 1 }
 0x69b   :  { %903 = vsyncpa [#allocation6], 1 }
 0x69c   :  { %905 = vsyncpa [#allocation6 + $0x1], 1 }
 0x69d   :  { %906 = vsyncpa [#allocation9], 1 }
 0x69e   :  { %907 = vsyncpa [#allocation12], 1 }
 0x69f   :  { %908 = vsyncpa [#allocation4], 1 }
 0x6a0   :  { %910 = vsyncpa [#allocation4 + $0x1], 1 }

</bundles_post_ra>
